<compile_context>
chip_gen: v6e
topology: v6e:2x2x1
jax: 0.10.0
libtpu: 0.0.40
codegen_flags: <defaults>
</compile_context>

<pallas_src>
import functools
import math

import jax
import jax.numpy as jnp
import numpy as np
from jax.experimental import pallas as pl
from jax.experimental.pallas import tpu as pltpu


def _round_up(x, m):
    return ((x + m - 1) // m) * m


# ---------------------------------------------------------------------------
# Fused decoder kernel (no grid; layer loop unrolled at trace time)
# ---------------------------------------------------------------------------

def _decoder_kernel(x_ref, h_ref, c_ref, w_ref, b_ref, ow_ref, ob_ref,
                    h_out_ref, c_out_ref, pred_ref):
    """Single timestep, all LSTM layers + output Linear.

    x_ref  : (B, Dx)            bf16  zero-padded timestep input (Dx multiple of 128)
    h_ref  : (n_layers, B, Hp)  f32   incoming hidden states (Hp multiple of 128)
    c_ref  : (n_layers, B, Hp)  f32   incoming cell states
    w_ref  : (n_layers, Dx+Hp, 4*Hp) bf16  fused [W_ih ; W_hh], gate-blocked to Hp
    b_ref  : (n_layers, 1, 4*Hp)     f32   combined b_ih + b_hh (gate-blocked to Hp)
    ow_ref : (Hp, Op)           bf16  output Linear weight (Op multiple of 128)
    ob_ref : (1, Op)            f32   output Linear bias
    """
    n_layers, _, hp = h_ref.shape
    dx = x_ref.shape[-1]

    x = x_ref[...]                                   # (B, Dx) bf16 running layer input
    h_new = None
    for layer in range(n_layers):                    # static, tiny -> unrolled at trace time
        h_prev = h_ref[layer, :, :]                  # (B, Hp) f32
        c_prev = c_ref[layer, :, :]                  # (B, Hp) f32

        # One fused MXU matmul per layer: [x, h] @ [W_ih ; W_hh], f32 accumulation.
        xh = jnp.concatenate([x, h_prev.astype(jnp.bfloat16)], axis=-1)   # (B, Dx+Hp) bf16
        gates = (jnp.dot(xh, w_ref[layer, :, :], preferred_element_type=jnp.float32)
                 + b_ref[layer, :, :])               # (B, 4*Hp) f32

        # PyTorch gate order: [i, f, g, o]; every slice is 128-lane aligned (Hp % 128 == 0).
        i_g = jax.nn.sigmoid(gates[:, 0 * hp:1 * hp])
        f_g = jax.nn.sigmoid(gates[:, 1 * hp:2 * hp])
        g_g = jnp.tanh(gates[:, 2 * hp:3 * hp])
        o_g = jax.nn.sigmoid(gates[:, 3 * hp:4 * hp])

        c_new = f_g * c_prev + i_g * g_g
        h_new = o_g * jnp.tanh(c_new)

        # Lane-dense, unconditional stores (padded columns stay exactly zero).
        h_out_ref[layer, :, :] = h_new
        c_out_ref[layer, :, :] = c_new

        # This layer's output becomes the next layer's input (registers, no scratch).
        x = h_new.astype(jnp.bfloat16)
        if dx > hp:                                  # static branch: only if input_dim > hid_dim
            x = jnp.concatenate(
                [x, jnp.zeros((x.shape[0], dx - hp), jnp.bfloat16)], axis=-1)

    # Output Linear fused on the last layer's h while it is still live.
    pred_ref[...] = (jnp.dot(h_new.astype(jnp.bfloat16), ow_ref[...],
                             preferred_element_type=jnp.float32)
                     + ob_ref[...])


# ---------------------------------------------------------------------------
# Wrapper (pads to lane-dense shapes, calls the kernel, slices back)
# ---------------------------------------------------------------------------

def decoder_forward(params, inputs, hidden, cell, *, output_dim):
    """inputs: (B, input_dim); hidden, cell: (n_layers, B, H).

    Returns (prediction (B,1,output_dim), hidden (n_layers,B,H), cell (n_layers,B,H)).
    """
    n_layers, B, H = hidden.shape
    w, b = params["w"], params["b"]
    out_w, out_b = params["out_w"], params["out_b"]

    hp = w.shape[2] // 4
    dx = w.shape[1] - hp
    op = out_w.shape[1]
    in_dim = inputs.shape[1]

    # Lane-dense (zero-padded) kernel operands.
    x_pad = jnp.zeros((B, dx), jnp.bfloat16).at[:, :in_dim].set(
        inputs.astype(jnp.bfloat16))
    h_pad = jnp.pad(hidden.astype(jnp.float32), ((0, 0), (0, 0), (0, hp - H)))
    c_pad = jnp.pad(cell.astype(jnp.float32), ((0, 0), (0, 0), (0, hp - H)))

    flops = int(2 * n_layers * B * (dx + hp) * 4 * hp + 2 * B * hp * op)
    transcendentals = int(n_layers * B * 5 * hp)
    param_bytes = int(w.size * w.dtype.itemsize + b.size * 4
                      + out_w.size * out_w.dtype.itemsize + out_b.size * 4)
    io_bytes = int(2 * x_pad.size + 4 * (2 * h_pad.size + 2 * c_pad.size) + 4 * B * op)
    bytes_accessed = param_bytes + io_bytes

    # VMEM budget derived from actual footprint (works on v5e/v6e 128 MiB and v7x 64 MiB).
    vmem_limit = int(min(64 * 1024 * 1024,
                         max(4 * (param_bytes + io_bytes), 16 * 1024 * 1024)))

    vmem = pltpu.MemorySpace.VMEM
    hidden_out_p, cell_out_p, pred_p = pl.pallas_call(
        _decoder_kernel,
        out_shape=(jax.ShapeDtypeStruct((n_layers, B, hp), jnp.float32),
                   jax.ShapeDtypeStruct((n_layers, B, hp), jnp.float32),
                   jax.ShapeDtypeStruct((B, op), jnp.float32)),
        in_specs=[pl.BlockSpec(memory_space=vmem)] * 7,
        out_specs=(pl.BlockSpec(memory_space=vmem),
                   pl.BlockSpec(memory_space=vmem),
                   pl.BlockSpec(memory_space=vmem)),
        compiler_params=pltpu.CompilerParams(vmem_limit_bytes=vmem_limit),
        cost_estimate=pl.CostEstimate(flops=flops,
                                      transcendentals=transcendentals,
                                      bytes_accessed=bytes_accessed),
    )(x_pad, h_pad, c_pad, w, b, out_w, out_b)

    prediction = pred_p[:, :output_dim][:, None, :]      # (B, 1, output_dim)
    hidden_out = hidden_out_p[..., :H]
    cell_out = cell_out_p[..., :H]
    return prediction, hidden_out, cell_out


# ---------------------------------------------------------------------------
# Parameter init (PyTorch LSTM uniform(-k, k) scheme), lane-dense fused layout
# ---------------------------------------------------------------------------

def init_decoder_params(key, input_dim, hid_dim, output_dim, n_layers,
                        param_dtype=jnp.bfloat16):
    k = 1.0 / math.sqrt(hid_dim)
    hp = _round_up(hid_dim, 128)
    in_p = _round_up(input_dim, 128)
    dx = max(in_p, hp)                     # shared (padded) layer-input width
    d_cat = dx + hp

    w = np.zeros((n_layers, d_cat, 4 * hp), np.float32)
    b = np.zeros((n_layers, 1, 4 * hp), np.float32)
    for layer in range(n_layers):
        d_in = input_dim if layer == 0 else hid_dim
        key, k1, k2, k3, k4 = jax.random.split(key, 5)
        w_ih = np.asarray(jax.random.uniform(k1, (d_in, 4 * hid_dim), jnp.float32, -k, k))
        w_hh = np.asarray(jax.random.uniform(k2, (hid_dim, 4 * hid_dim), jnp.float32, -k, k))
        b_ih = np.asarray(jax.random.uniform(k3, (4 * hid_dim,), jnp.float32, -k, k))
        b_hh = np.asarray(jax.random.uniform(k4, (4 * hid_dim,), jnp.float32, -k, k))
        b_sum = b_ih + b_hh
        # Gate-blocked, 128-aligned fused [W_ih ; W_hh] with zero padding everywhere else.
        for g in range(4):
            w[layer, :d_in, g * hp:g * hp + hid_dim] = w_ih[:, g * hid_dim:(g + 1) * hid_dim]
            w[layer, dx:dx + hid_dim, g * hp:g * hp + hid_dim] = \
                w_hh[:, g * hid_dim:(g + 1) * hid_dim]
            b[layer, 0, g * hp:g * hp + hid_dim] = b_sum[g * hid_dim:(g + 1) * hid_dim]

    key, k1, k2 = jax.random.split(key, 3)
    op = _round_up(output_dim, 128)
    out_w = np.zeros((hp, op), np.float32)
    out_b = np.zeros((1, op), np.float32)
    out_w[:hid_dim, :output_dim] = np.asarray(
        jax.random.uniform(k1, (hid_dim, output_dim), jnp.float32, -k, k))
    out_b[0, :output_dim] = np.asarray(
        jax.random.uniform(k2, (output_dim,), jnp.float32, -k, k))

    return {
        "w": jnp.asarray(w, param_dtype),        # (n_layers, Dx+Hp, 4*Hp) bf16
        "b": jnp.asarray(b, jnp.float32),        # (n_layers, 1, 4*Hp)     f32
        "out_w": jnp.asarray(out_w, param_dtype),  # (Hp, Op)              bf16
        "out_b": jnp.asarray(out_b, jnp.float32),  # (1, Op)               f32
    }


# ---------------------------------------------------------------------------
# Pure-JAX reference (same bf16-rounded weights, f32 math) for a sanity check
# ---------------------------------------------------------------------------

def decoder_reference(params, inputs, hidden, cell, *, output_dim):
    n_layers, B, H = hidden.shape
    w = params["w"].astype(jnp.float32)
    b = params["b"].astype(jnp.float32)
    out_w = params["out_w"].astype(jnp.float32)
    out_b = params["out_b"].astype(jnp.float32)
    hp = w.shape[2] // 4
    dx = w.shape[1] - hp

    x = jnp.zeros((B, dx), jnp.float32).at[:, :inputs.shape[1]].set(inputs)
    h = jnp.pad(hidden, ((0, 0), (0, 0), (0, hp - H)))
    c = jnp.pad(cell, ((0, 0), (0, 0), (0, hp - H)))
    hs, cs = [], []
    for layer in range(n_layers):
        xh = jnp.concatenate([x, h[layer]], axis=-1)
        gates = xh @ w[layer] + b[layer]
        i_g = jax.nn.sigmoid(gates[:, 0 * hp:1 * hp])
        f_g = jax.nn.sigmoid(gates[:, 1 * hp:2 * hp])
        g_g = jnp.tanh(gates[:, 2 * hp:3 * hp])
        o_g = jax.nn.sigmoid(gates[:, 3 * hp:4 * hp])
        c_new = f_g * c[layer] + i_g * g_g
        h_new = o_g * jnp.tanh(c_new)
        hs.append(h_new)
        cs.append(c_new)
        x = jnp.zeros((B, dx), jnp.float32).at[:, :hp].set(h_new)
    pred = hs[-1] @ out_w + out_b
    return (pred[:, :output_dim][:, None, :],
            jnp.stack(hs)[..., :H], jnp.stack(cs)[..., :H])


# ---------------------------------------------------------------------------

if __name__ == "__main__":
    B = 2
    INPUT_DIM = 8
    HID_DIM = 32
    OUTPUT_DIM = 16
    N_LAYERS = 2

    key = jax.random.PRNGKey(0)
    pkey, k_in, k_h, k_c = jax.random.split(key, 4)

    params = init_decoder_params(pkey, INPUT_DIM, HID_DIM, OUTPUT_DIM, N_LAYERS)

    inputs = jax.random.normal(k_in, (B, INPUT_DIM), jnp.float32)
    hidden = jax.random.normal(k_h, (N_LAYERS, B, HID_DIM), jnp.float32)
    cell = jax.random.normal(k_c, (N_LAYERS, B, HID_DIM), jnp.float32)

    fwd = jax.jit(functools.partial(decoder_forward, params, output_dim=OUTPUT_DIM))
    prediction, hidden_out, cell_out = fwd(inputs, hidden, cell)
    jax.block_until_ready((prediction, hidden_out, cell_out))

    assert prediction.shape == (B, 1, OUTPUT_DIM)
    assert hidden_out.shape == (N_LAYERS, B, HID_DIM)
    assert cell_out.shape == (N_LAYERS, B, HID_DIM)

    # Numerical sanity check vs. pure-JAX reference (bf16 weights, f32 math).
    pred_r, hid_r, cell_r = decoder_reference(params, inputs, hidden, cell,
                                              output_dim=OUTPUT_DIM)
    assert np.allclose(np.asarray(prediction), np.asarray(pred_r), atol=5e-2, rtol=5e-2)
    assert np.allclose(np.asarray(hidden_out), np.asarray(hid_r), atol=5e-2, rtol=5e-2)
    assert np.allclose(np.asarray(cell_out), np.asarray(cell_r), atol=5e-2, rtol=5e-2)

    print("KERNEL_OK")
</pallas_src>

<mosaic_0001>
module attributes {stable_mosaic.version = 11 : i64} {
  func.func @_decoder_kernel(%arg0: memref<2x128xbf16, #tpu.memory_space<vmem>>, %arg1: memref<2x2x128xf32, #tpu.memory_space<vmem>>, %arg2: memref<2x2x128xf32, #tpu.memory_space<vmem>>, %arg3: memref<2x256x512xbf16, #tpu.memory_space<vmem>>, %arg4: memref<2x1x512xf32, #tpu.memory_space<vmem>>, %arg5: memref<128x128xbf16, #tpu.memory_space<vmem>>, %arg6: memref<1x128xf32, #tpu.memory_space<vmem>>, %arg7: memref<2x2x128xf32, #tpu.memory_space<vmem>>, %arg8: memref<2x2x128xf32, #tpu.memory_space<vmem>>, %arg9: memref<2x128xf32, #tpu.memory_space<vmem>>) attributes {dimension_semantics = [], scalar_prefetch = 0 : i64, scratch_operands = 0 : i64, tpu.core_type = #tpu.core_type<tc>} {
    %c0 = arith.constant 0 : index
    %c0_0 = arith.constant 0 : index
    %0 = vector.load %arg0[%c0, %c0_0] : memref<2x128xbf16, #tpu.memory_space<vmem>>, vector<2x128xbf16>
    %c0_1 = arith.constant 0 : index
    %c0_2 = arith.constant 0 : index
    %c0_3 = arith.constant 0 : index
    %1 = vector.load %arg1[%c0_1, %c0_2, %c0_3] : memref<2x2x128xf32, #tpu.memory_space<vmem>>, vector<1x2x128xf32>
    %2 = vector.shape_cast %1 : vector<1x2x128xf32> to vector<2x128xf32>
    %c0_4 = arith.constant 0 : index
    %c0_5 = arith.constant 0 : index
    %c0_6 = arith.constant 0 : index
    %3 = vector.load %arg2[%c0_4, %c0_5, %c0_6] : memref<2x2x128xf32, #tpu.memory_space<vmem>>, vector<1x2x128xf32>
    %4 = vector.shape_cast %3 : vector<1x2x128xf32> to vector<2x128xf32>
    %5 = arith.truncf %2 : vector<2x128xf32> to vector<2x128xbf16>
    %6 = tpu.concatenate %0, %5 in 1 : vector<2x128xbf16>, vector<2x128xbf16> -> vector<2x256xbf16>
    %c0_7 = arith.constant 0 : index
    %c0_8 = arith.constant 0 : index
    %c0_9 = arith.constant 0 : index
    %7 = vector.load %arg3[%c0_7, %c0_8, %c0_9] : memref<2x256x512xbf16, #tpu.memory_space<vmem>>, vector<1x256x512xbf16>
    %8 = vector.shape_cast %7 : vector<1x256x512xbf16> to vector<256x512xbf16>
    %cst = arith.constant dense<0.000000e+00> : vector<2x512xf32>
    %9 = tpu.matmul %6, %8, %cst {dimension_numbers = #tpu.dot_dimension_numbers<[1], [0], [0], [1], [0, 0, 1, 1], [], []>} : vector<2x256xbf16>, vector<256x512xbf16>, vector<2x512xf32> -> vector<2x512xf32>
    %c0_10 = arith.constant 0 : index
    %c0_11 = arith.constant 0 : index
    %c0_12 = arith.constant 0 : index
    %10 = vector.load %arg4[%c0_10, %c0_11, %c0_12] : memref<2x1x512xf32, #tpu.memory_space<vmem>>, vector<1x1x512xf32>
    %11 = vector.shape_cast %10 : vector<1x1x512xf32> to vector<1x512xf32>
    %12 = vector.broadcast %11 : vector<1x512xf32> to vector<2x512xf32>
    %13 = arith.addf %9, %12 : vector<2x512xf32>
    %14 = vector.extract_strided_slice %13 {offsets = [0, 0], sizes = [2, 128], strides = [1, 1]} : vector<2x512xf32> to vector<2x128xf32>
    %15 = arith.negf %14 : vector<2x128xf32>
    %16 = math.exp %15 : vector<2x128xf32>
    %cst_13 = arith.constant 1.000000e+00 : f32
    %17 = vector.broadcast %cst_13 : f32 to vector<2x128xf32>
    %18 = arith.addf %17, %16 : vector<2x128xf32>
    %19 = arith.divf %17, %18 : vector<2x128xf32>
    %20 = vector.extract_strided_slice %13 {offsets = [0, 128], sizes = [2, 128], strides = [1, 1]} : vector<2x512xf32> to vector<2x128xf32>
    %21 = arith.negf %20 : vector<2x128xf32>
    %22 = math.exp %21 : vector<2x128xf32>
    %cst_14 = arith.constant 1.000000e+00 : f32
    %23 = vector.broadcast %cst_14 : f32 to vector<2x128xf32>
    %24 = arith.addf %23, %22 : vector<2x128xf32>
    %25 = arith.divf %23, %24 : vector<2x128xf32>
    %26 = vector.extract_strided_slice %13 {offsets = [0, 256], sizes = [2, 128], strides = [1, 1]} : vector<2x512xf32> to vector<2x128xf32>
    %27 = math.tanh %26 : vector<2x128xf32>
    %28 = vector.extract_strided_slice %13 {offsets = [0, 384], sizes = [2, 128], strides = [1, 1]} : vector<2x512xf32> to vector<2x128xf32>
    %29 = arith.negf %28 : vector<2x128xf32>
    %30 = math.exp %29 : vector<2x128xf32>
    %cst_15 = arith.constant 1.000000e+00 : f32
    %31 = vector.broadcast %cst_15 : f32 to vector<2x128xf32>
    %32 = arith.addf %31, %30 : vector<2x128xf32>
    %33 = arith.divf %31, %32 : vector<2x128xf32>
    %34 = arith.mulf %25, %4 : vector<2x128xf32>
    %35 = arith.mulf %19, %27 : vector<2x128xf32>
    %36 = arith.addf %34, %35 : vector<2x128xf32>
    %37 = math.tanh %36 : vector<2x128xf32>
    %38 = arith.mulf %33, %37 : vector<2x128xf32>
    %c0_16 = arith.constant 0 : index
    %c0_17 = arith.constant 0 : index
    %c0_18 = arith.constant 0 : index
    %39 = vector.load %arg7[%c0_16, %c0_17, %c0_18] : memref<2x2x128xf32, #tpu.memory_space<vmem>>, vector<1x2x128xf32>
    %40 = vector.shape_cast %39 : vector<1x2x128xf32> to vector<2x128xf32>
    %41 = vector.shape_cast %38 : vector<2x128xf32> to vector<1x2x128xf32>
    tpu.vector_store %arg7[%c0_16, %c0_17, %c0_18], %41 {strides = array<i32>} : memref<2x2x128xf32, #tpu.memory_space<vmem>>, vector<1x2x128xf32>,
    %c0_19 = arith.constant 0 : index
    %c0_20 = arith.constant 0 : index
    %c0_21 = arith.constant 0 : index
    %42 = vector.load %arg8[%c0_19, %c0_20, %c0_21] : memref<2x2x128xf32, #tpu.memory_space<vmem>>, vector<1x2x128xf32>
    %43 = vector.shape_cast %42 : vector<1x2x128xf32> to vector<2x128xf32>
    %44 = vector.shape_cast %36 : vector<2x128xf32> to vector<1x2x128xf32>
    tpu.vector_store %arg8[%c0_19, %c0_20, %c0_21], %44 {strides = array<i32>} : memref<2x2x128xf32, #tpu.memory_space<vmem>>, vector<1x2x128xf32>,
    %45 = arith.truncf %38 : vector<2x128xf32> to vector<2x128xbf16>
    %c1 = arith.constant 1 : index
    %c0_22 = arith.constant 0 : index
    %c0_23 = arith.constant 0 : index
    %46 = vector.load %arg1[%c1, %c0_22, %c0_23] : memref<2x2x128xf32, #tpu.memory_space<vmem>>, vector<1x2x128xf32>
    %47 = vector.shape_cast %46 : vector<1x2x128xf32> to vector<2x128xf32>
    %c1_24 = arith.constant 1 : index
    %c0_25 = arith.constant 0 : index
    %c0_26 = arith.constant 0 : index
    %48 = vector.load %arg2[%c1_24, %c0_25, %c0_26] : memref<2x2x128xf32, #tpu.memory_space<vmem>>, vector<1x2x128xf32>
    %49 = vector.shape_cast %48 : vector<1x2x128xf32> to vector<2x128xf32>
    %50 = arith.truncf %47 : vector<2x128xf32> to vector<2x128xbf16>
    %51 = tpu.concatenate %45, %50 in 1 : vector<2x128xbf16>, vector<2x128xbf16> -> vector<2x256xbf16>
    %c1_27 = arith.constant 1 : index
    %c0_28 = arith.constant 0 : index
    %c0_29 = arith.constant 0 : index
    %52 = vector.load %arg3[%c1_27, %c0_28, %c0_29] : memref<2x256x512xbf16, #tpu.memory_space<vmem>>, vector<1x256x512xbf16>
    %53 = vector.shape_cast %52 : vector<1x256x512xbf16> to vector<256x512xbf16>
    %cst_30 = arith.constant dense<0.000000e+00> : vector<2x512xf32>
    %54 = tpu.matmul %51, %53, %cst_30 {dimension_numbers = #tpu.dot_dimension_numbers<[1], [0], [0], [1], [0, 0, 1, 1], [], []>} : vector<2x256xbf16>, vector<256x512xbf16>, vector<2x512xf32> -> vector<2x512xf32>
    %c1_31 = arith.constant 1 : index
    %c0_32 = arith.constant 0 : index
    %c0_33 = arith.constant 0 : index
    %55 = vector.load %arg4[%c1_31, %c0_32, %c0_33] : memref<2x1x512xf32, #tpu.memory_space<vmem>>, vector<1x1x512xf32>
    %56 = vector.shape_cast %55 : vector<1x1x512xf32> to vector<1x512xf32>
    %57 = vector.broadcast %56 : vector<1x512xf32> to vector<2x512xf32>
    %58 = arith.addf %54, %57 : vector<2x512xf32>
    %59 = vector.extract_strided_slice %58 {offsets = [0, 0], sizes = [2, 128], strides = [1, 1]} : vector<2x512xf32> to vector<2x128xf32>
    %60 = arith.negf %59 : vector<2x128xf32>
    %61 = math.exp %60 : vector<2x128xf32>
    %cst_34 = arith.constant 1.000000e+00 : f32
    %62 = vector.broadcast %cst_34 : f32 to vector<2x128xf32>
    %63 = arith.addf %62, %61 : vector<2x128xf32>
    %64 = arith.divf %62, %63 : vector<2x128xf32>
    %65 = vector.extract_strided_slice %58 {offsets = [0, 128], sizes = [2, 128], strides = [1, 1]} : vector<2x512xf32> to vector<2x128xf32>
    %66 = arith.negf %65 : vector<2x128xf32>
    %67 = math.exp %66 : vector<2x128xf32>
    %cst_35 = arith.constant 1.000000e+00 : f32
    %68 = vector.broadcast %cst_35 : f32 to vector<2x128xf32>
    %69 = arith.addf %68, %67 : vector<2x128xf32>
    %70 = arith.divf %68, %69 : vector<2x128xf32>
    %71 = vector.extract_strided_slice %58 {offsets = [0, 256], sizes = [2, 128], strides = [1, 1]} : vector<2x512xf32> to vector<2x128xf32>
    %72 = math.tanh %71 : vector<2x128xf32>
    %73 = vector.extract_strided_slice %58 {offsets = [0, 384], sizes = [2, 128], strides = [1, 1]} : vector<2x512xf32> to vector<2x128xf32>
    %74 = arith.negf %73 : vector<2x128xf32>
    %75 = math.exp %74 : vector<2x128xf32>
    %cst_36 = arith.constant 1.000000e+00 : f32
    %76 = vector.broadcast %cst_36 : f32 to vector<2x128xf32>
    %77 = arith.addf %76, %75 : vector<2x128xf32>
    %78 = arith.divf %76, %77 : vector<2x128xf32>
    %79 = arith.mulf %70, %49 : vector<2x128xf32>
    %80 = arith.mulf %64, %72 : vector<2x128xf32>
    %81 = arith.addf %79, %80 : vector<2x128xf32>
    %82 = math.tanh %81 : vector<2x128xf32>
    %83 = arith.mulf %78, %82 : vector<2x128xf32>
    %c1_37 = arith.constant 1 : index
    %c0_38 = arith.constant 0 : index
    %c0_39 = arith.constant 0 : index
    %84 = vector.load %arg7[%c1_37, %c0_38, %c0_39] : memref<2x2x128xf32, #tpu.memory_space<vmem>>, vector<1x2x128xf32>
    %85 = vector.shape_cast %84 : vector<1x2x128xf32> to vector<2x128xf32>
    %86 = vector.shape_cast %83 : vector<2x128xf32> to vector<1x2x128xf32>
    tpu.vector_store %arg7[%c1_37, %c0_38, %c0_39], %86 {strides = array<i32>} : memref<2x2x128xf32, #tpu.memory_space<vmem>>, vector<1x2x128xf32>,
    %c1_40 = arith.constant 1 : index
    %c0_41 = arith.constant 0 : index
    %c0_42 = arith.constant 0 : index
    %87 = vector.load %arg8[%c1_40, %c0_41, %c0_42] : memref<2x2x128xf32, #tpu.memory_space<vmem>>, vector<1x2x128xf32>
    %88 = vector.shape_cast %87 : vector<1x2x128xf32> to vector<2x128xf32>
    %89 = vector.shape_cast %81 : vector<2x128xf32> to vector<1x2x128xf32>
    tpu.vector_store %arg8[%c1_40, %c0_41, %c0_42], %89 {strides = array<i32>} : memref<2x2x128xf32, #tpu.memory_space<vmem>>, vector<1x2x128xf32>,
    %90 = arith.truncf %83 : vector<2x128xf32> to vector<2x128xbf16>
    %c0_43 = arith.constant 0 : index
    %c0_44 = arith.constant 0 : index
    %91 = vector.load %arg5[%c0_43, %c0_44] : memref<128x128xbf16, #tpu.memory_space<vmem>>, vector<128x128xbf16>
    %cst_45 = arith.constant dense<0.000000e+00> : vector<2x128xf32>
    %92 = tpu.matmul %90, %91, %cst_45 {dimension_numbers = #tpu.dot_dimension_numbers<[1], [0], [0], [1], [0, 0, 1, 1], [], []>} : vector<2x128xbf16>, vector<128x128xbf16>, vector<2x128xf32> -> vector<2x128xf32>
    %c0_46 = arith.constant 0 : index
    %c0_47 = arith.constant 0 : index
    %93 = vector.load %arg6[%c0_46, %c0_47] : memref<1x128xf32, #tpu.memory_space<vmem>>, vector<1x128xf32>
    %94 = vector.broadcast %93 : vector<1x128xf32> to vector<2x128xf32>
    %95 = arith.addf %92, %94 : vector<2x128xf32>
    %c0_48 = arith.constant 0 : index
    %c0_49 = arith.constant 0 : index
    %96 = vector.load %arg9[%c0_48, %c0_49] : memref<2x128xf32, #tpu.memory_space<vmem>>, vector<2x128xf32>
    tpu.vector_store %arg9[%c0_48, %c0_49], %95 {strides = array<i32>} : memref<2x128xf32, #tpu.memory_space<vmem>>, vector<2x128xf32>,
    return
  }
}

</mosaic_0001>

<bundles_post_ra>
// kernel: decoder_forward.1
= control target key start
LH: loop header
LB: loop body
LE: loop exit
PB: predicated region body
PF: predicated region fallthrough
CT: control target
= control target key end

     0   :  { %15 = vsyncpa [#allocation3], 0  ;;  %s1914_s0 = inlined_call_operand.vmem [shape: bf16[2,128], index: 0, kind: input, shape index: {}]   ;;  %s1915_s1 = inlined_call_operand.vmem [shape: f32[2,2,128], index: 1, kind: input, shape index: {}]   ;;  %s1916_s2 = inlined_call_operand.vmem [shape: f32[2,2,128], index: 2, kind: input, shape index: {}]   ;;  %s1917_s3 = inlined_call_operand.hbm [shape: bf16[2,256,512], index: 3, kind: input, shape index: {}]   ;;  %s1918_s4 = inlined_call_operand.vmem [shape: f32[2,1,512], index: 4, kind: input, shape index: {}]   ;;  %s1919_s5 = inlined_call_operand.hbm [shape: bf16[128,128], index: 5, kind: input, shape index: {}]   ;;  %s1920_s6 = inlined_call_operand.vmem [shape: f32[1,128], index: 6, kind: input, shape index: {}]   ;;  %s1921_s7 = inlined_call_operand.hbm [shape: f32[2,2,128], index: 7, kind: output, shape index: {0}]   ;;  %s1922_s8 = inlined_call_operand.hbm [shape: f32[2,2,128], index: 8, kind: output, shape index: {1}]   ;;  %s1923_s9 = inlined_call_operand.hbm [shape: f32[2,128], index: 9, kind: output, shape index: {2}]  }
   0x1   :  { %16 = vsyncpa [#allocation6], 0 }
   0x2   :  { %17 = vsyncpa [#allocation4], 0 }
   0x3   :  { %18 = vsyncpa [#allocation9], 0  ;;  %s1790_s30 = smov [#allocation2]  }
   0x4   :  { %s30_s10 = sshll.u32 %s1790_s30, 4  ;;  %s31_s10 = int_to_ptr.vmem [resolvable:$true] %s30_s10 }
   0x5   :  { %s1690_s11 = scalar_lea.vmem %s31_s10, 16384  ;;  %p1695_p1 = scmp.lt.s32.totalorder %s31_s10, %s31_s10 }
   0x6   :  { %p1691_p0 = scmp.ne.s32.totalorder %s31_s10, %s1690_s11  ;;  %p1696_p2 = scmp.lt.s32.totalorder %s1690_s11, %s1690_s11 }
   0x8   :  { %p1697_p3 = por %p1696_p2, %p1695_p1 }
   0xa   :  { %p1698_p4 = pnand %p1697_p3, %p1691_p0 }
   0xc   :  { %1701 = shalt.err (!%p1698_p4)
}
   0xd   :  { %s1791_s12 = smov 256   ;;  %s1792_s13 = smov 16  }
   0xe   :  { %36 = dma.hbm_to_vmem [thread:$0]  %s1917_s3, 16384, %s31_s10, [#allocation3], %s1791_s12, %s1791_s12, %s1792_s13  }
   0xf   :  { %s1793_s16 = smov [#allocation5]  }
  0x10   :  { %s44_s17 = sshll.u32 %s1793_s16, 4  ;;  %s45_s17 = int_to_ptr.vmem [resolvable:$true] %s44_s17 }
  0x11   :  { %s1710_s18 = scalar_lea.vmem %s45_s17, 1024  ;;  %p1715_p6 = scmp.lt.s32.totalorder %s45_s17, %s45_s17 }
  0x12   :  { %p1711_p5 = scmp.ne.s32.totalorder %s45_s17, %s1710_s18  ;;  %p1716_p7 = scmp.lt.s32.totalorder %s1710_s18, %s1710_s18 }
  0x14   :  { %p1717_p8 = por %p1716_p7, %p1715_p6 }
  0x16   :  { %p1718_p9 = pnand %p1717_p8, %p1711_p5 }
  0x18   :  { %1721 = shalt.err (!%p1718_p9)
}
  0x19   :  { %s1794_s19 = smov 64   ;;  %s1795_s20 = smov 4  }
  0x1a   :  { %50 = dma.hbm_to_vmem [thread:$0]  %s1919_s5, 1024, %s45_s17, [#allocation6], %s1794_s19, %s1794_s19, %s1795_s20  }
  0x1b   :  { %1782 = dma.done.wait [#allocation3], 16384  }
  0x1c   :  { %1783 = vsyncadd [#allocation3], 4294950912 }
  0x1d   :  { %1784 = dma.done.wait [#allocation6], 1024  }
  0x1e   :  { %1785 = vsyncadd [#allocation6], 4294966272  ;;  %v1450_v0 = vld [vmem:[#allocation2 + $0xe4] ss:$16 sps:$4 sm:$0xff]   ;;  %v1452_v1 = vld [vmem:[#allocation2 + $0xe0] ss:$16 sps:$4 sm:$0xff]  }
  0x1f   :  { %470 = vmatprep.subr.bf16.mxu0 %v1450_v0  ;;  %v1453_v2 = vld [vmem:[#allocation2 + $0xc4] ss:$16 sps:$4 sm:$0xff]   ;;  %v1455_v3 = vld [vmem:[#allocation2 + $0xc0] ss:$16 sps:$4 sm:$0xff]   ;;  %v1461_v5 = vld [vmem:[#allocation2 + $0xec] ss:$16 sps:$4 sm:$0xff]  }
  0x20   :  { %471 = vmatpush1.bf16.msra.mxu0 %v1452_v1  ;;  %v1456_v4 = vld [vmem:[#allocation2 + $0xa4] ss:$16 sps:$4 sm:$0xff]   ;;  %v1464_v6 = vld [vmem:[#allocation2 + $0xe8] ss:$16 sps:$4 sm:$0xff]   ;;  %v1458_v7 = vld [vmem:[#allocation2 + $0xa0] ss:$16 sps:$4 sm:$0xff]   ;;  %511 = vmatprep.subr.bf16.mxu1 %v1461_v5 }
  0x21   :  { %472 = vmatprep.subr.bf16.mxu0 %v1453_v2  ;;  %v1459_v8 = vld [vmem:[#allocation2 + $0x84] ss:$16 sps:$4 sm:$0xff]   ;;  %512 = vmatpush1.bf16.msra.mxu1 %v1464_v6  ;;  %v1467_v9 = vld [vmem:[#allocation2 + $0xcc] ss:$16 sps:$4 sm:$0xff]   ;;  %v1470_v10 = vld [vmem:[#allocation2 + $0xc8] ss:$16 sps:$4 sm:$0xff]  }
  0x22   :  { %513 = vmatprep.subr.bf16.mxu1 %v1467_v9  ;;  %v1463_v11 = vld [vmem:[#allocation2 + $0x80] ss:$16 sps:$4 sm:$0xff]   ;;  %v1465_v12 = vld [vmem:[#allocation2 + $0x64] ss:$16 sps:$4 sm:$0xff]   ;;  %v1473_v13 = vld [vmem:[#allocation2 + $0xac] ss:$16 sps:$4 sm:$0xff]  }
  0x23   :  { %v1476_v14 = vld [vmem:[#allocation2 + $0xa8] ss:$16 sps:$4 sm:$0xff]   ;;  %v1479_v15 = vld [vmem:[#allocation2 + $0x8c] ss:$16 sps:$4 sm:$0xff]   ;;  %v1469_v16 = vld [vmem:[#allocation2 + $0x60] ss:$16 sps:$4 sm:$0xff]  }
  0x24   :  { %473 = vmatpush1.bf16.msra.mxu0 %v1455_v3  ;;  %v1471_v17 = vld [vmem:[#allocation2 + $0x44] ss:$16 sps:$4 sm:$0xff]   ;;  %v1482_v18 = vld [vmem:[#allocation2 + $0x88] ss:$16 sps:$4 sm:$0xff]   ;;  %v1485_v19 = vld [vmem:[#allocation2 + $0x6c] ss:$16 sps:$4 sm:$0xff]  }
  0x25   :  { %474 = vmatprep.subr.bf16.mxu0 %v1456_v4  ;;  %514 = vmatpush1.bf16.msra.mxu1 %v1470_v10  ;;  %v1475_v20 = vld [vmem:[#allocation2 + $0x40] ss:$16 sps:$4 sm:$0xff]   ;;  %v1477_v21 = vld [vmem:[#allocation2 + $0x24] ss:$16 sps:$4 sm:$0xff]   ;;  %v1488_v22 = vld [vmem:[#allocation2 + $0x68] ss:$16 sps:$4 sm:$0xff]  }
  0x26   :  { %515 = vmatprep.subr.bf16.mxu1 %v1473_v13  ;;  %v1491_v23 = vld [vmem:[#allocation2 + $0x4c] ss:$16 sps:$4 sm:$0xff]   ;;  %v1481_v24 = vld [vmem:[#allocation2 + $0x20] ss:$16 sps:$4 sm:$0xff]   ;;  %v1483_v25 = vld [vmem:[#allocation2 + $0x4] ss:$16 sps:$4 sm:$0xff]  }
  0x27   :  { %v1494_v26 = vld [vmem:[#allocation2 + $0x48] ss:$16 sps:$4 sm:$0xff]   ;;  %v1497_v27 = vld [vmem:[#allocation2 + $0x2c] ss:$16 sps:$4 sm:$0xff]   ;;  %v1487_v28 = vld [vmem:[#allocation2] ss:$16 sps:$4 sm:$0xff]  }
  0x28   :  { %475 = vmatpush1.bf16.msra.mxu0 %v1458_v7  ;;  %v1489_v29 = vld [vmem:[#allocation2 + $0x1e4] ss:$16 sps:$4 sm:$0xff]   ;;  %v1500_v30 = vld [vmem:[#allocation2 + $0x28] ss:$16 sps:$4 sm:$0xff]   ;;  %v1503_v31 = vld [vmem:[#allocation2 + $0xc] ss:$16 sps:$4 sm:$0xff]  }
  0x29   :  { %476 = vmatprep.subr.bf16.mxu0 %v1459_v8  ;;  %516 = vmatpush1.bf16.msra.mxu1 %v1476_v14  ;;  %v1493_v32 = vld [vmem:[#allocation2 + $0x1e0] ss:$16 sps:$4 sm:$0xff]   ;;  %v1495_v33 = vld [vmem:[#allocation2 + $0x1c4] ss:$16 sps:$4 sm:$0xff]   ;;  %v1506_v34 = vld [vmem:[#allocation2 + $0x8] ss:$16 sps:$4 sm:$0xff]  }
  0x2a   :  { %517 = vmatprep.subr.bf16.mxu1 %v1479_v15  ;;  %v1509_v35 = vld [vmem:[#allocation2 + $0x1ec] ss:$16 sps:$4 sm:$0xff]   ;;  %v1499_v36 = vld [vmem:[#allocation2 + $0x1c0] ss:$16 sps:$4 sm:$0xff]   ;;  %v1501_v37 = vld [vmem:[#allocation2 + $0x1a4] ss:$16 sps:$4 sm:$0xff]  }
  0x2b   :  { %v1512_v38 = vld [vmem:[#allocation2 + $0x1e8] ss:$16 sps:$4 sm:$0xff]   ;;  %v1515_v39 = vld [vmem:[#allocation2 + $0x1cc] ss:$16 sps:$4 sm:$0xff]   ;;  %v61_v40 = vld [vmem:[%s1915_s1] sm:$0x3] }
  0x2c   :  { %477 = vmatpush1.bf16.msra.mxu0 %v1463_v11  ;;  %v1505_v41 = vld [vmem:[#allocation2 + $0x1a0] ss:$16 sps:$4 sm:$0xff]   ;;  %v63_v42 = vpack.c.bf16 %v61_v40, %v61_v40  ;;  %v1507_v43 = vld [vmem:[#allocation2 + $0x184] ss:$16 sps:$4 sm:$0xff]   ;;  %v1518_v44 = vld [vmem:[#allocation2 + $0x1c8] ss:$16 sps:$4 sm:$0xff]  }
  0x2d   :  { %478 = vmatprep.subr.bf16.mxu0 %v1465_v12  ;;  %518 = vmatpush1.bf16.msra.mxu1 %v1482_v18  ;;  %v1521_v45 = vld [vmem:[#allocation2 + $0x1ac] ss:$16 sps:$4 sm:$0xff]   ;;  %v1511_v46 = vld [vmem:[#allocation2 + $0x180] ss:$16 sps:$4 sm:$0xff]   ;;  %v1513_v47 = vld [vmem:[#allocation2 + $0x164] ss:$16 sps:$4 sm:$0xff]  }
  0x2e   :  { %519 = vmatprep.subr.bf16.mxu1 %v1485_v19  ;;  %502 = vmatprep.mubr.bf16.mxu0 %v63_v42  ;;  %v1524_v48 = vld [vmem:[#allocation2 + $0x1a8] ss:$16 sps:$4 sm:$0xff]   ;;  %v1527_v49 = vld [vmem:[#allocation2 + $0x18c] ss:$16 sps:$4 sm:$0xff]   ;;  %v1517_v50 = vld [vmem:[#allocation2 + $0x160] ss:$16 sps:$4 sm:$0xff]  }
  0x2f   :  { %543 = vmatprep.mubr.bf16.mxu1 %v63_v42  ;;  %v1519_v51 = vld [vmem:[#allocation2 + $0x144] ss:$16 sps:$4 sm:$0xff]   ;;  %v1530_v52 = vld [vmem:[#allocation2 + $0x188] ss:$16 sps:$4 sm:$0xff]   ;;  %v1533_v53 = vld [vmem:[#allocation2 + $0x16c] ss:$16 sps:$4 sm:$0xff]  }
  0x30   :  { %479 = vmatpush1.bf16.msra.mxu0 %v1469_v16  ;;  %v1523_v54 = vld [vmem:[#allocation2 + $0x140] ss:$16 sps:$4 sm:$0xff]   ;;  %v1525_v55 = vld [vmem:[#allocation2 + $0x124] ss:$16 sps:$4 sm:$0xff]   ;;  %v1536_v56 = vld [vmem:[#allocation2 + $0x168] ss:$16 sps:$4 sm:$0xff]  }
  0x31   :  { %480 = vmatprep.subr.bf16.mxu0 %v1471_v17  ;;  %520 = vmatpush1.bf16.msra.mxu1 %v1488_v22  ;;  %v1537_v57 = vld [vmem:[#allocation2 + $0x14c] ss:$16 sps:$4 sm:$0xff]   ;;  %v1529_v58 = vld [vmem:[#allocation2 + $0x120] ss:$16 sps:$4 sm:$0xff]   ;;  %v1531_v59 = vld [vmem:[#allocation2 + $0x104] ss:$16 sps:$4 sm:$0xff]  }
  0x32   :  { %521 = vmatprep.subr.bf16.mxu1 %v1491_v23  ;;  %v1539_v60 = vld [vmem:[#allocation2 + $0x148] ss:$16 sps:$4 sm:$0xff]   ;;  %v1540_v61 = vld [vmem:[#allocation2 + $0x12c] ss:$16 sps:$4 sm:$0xff]   ;;  %v1535_v62 = vld [vmem:[#allocation2 + $0x100] ss:$16 sps:$4 sm:$0xff]  }
  0x33   :  { %v1542_v63 = vld [vmem:[#allocation2 + $0x128] ss:$16 sps:$4 sm:$0xff]   ;;  %v1548_v0 = vld [vmem:[#allocation2 + $0x2e4] ss:$16 sps:$4 sm:$0xff]   ;;  %v1543_v1 = vld [vmem:[#allocation2 + $0x10c] ss:$16 sps:$4 sm:$0xff]  }
  0x34   :  { %481 = vmatpush1.bf16.msra.mxu0 %v1475_v20  ;;  %v60_v2 = vld [vmem:[%s1914_s0] sm:$0x1]  ;;  %v1545_v4 = vld [vmem:[#allocation2 + $0x108] ss:$16 sps:$4 sm:$0xff]   ;;  %v1554_v5 = vld [vmem:[#allocation2 + $0x2c4] ss:$16 sps:$4 sm:$0xff]  }
  0x35   :  { %482 = vmatprep.subr.bf16.mxu0 %v1477_v21  ;;  %522 = vmatpush1.bf16.msra.mxu1 %v1494_v26  ;;  %v1546_v3 = vld [vmem:[#allocation2 + $0x2e0] ss:$16 sps:$4 sm:$0xff]   ;;  %v1551_v6 = vld [vmem:[#allocation2 + $0x2ec] ss:$16 sps:$4 sm:$0xff]   ;;  %v1549_v8 = vld [vmem:[#allocation2 + $0x2e8] ss:$16 sps:$4 sm:$0xff]  }
  0x36   :  { %523 = vmatprep.subr.bf16.mxu1 %v1497_v27  ;;  %v1552_v7 = vld [vmem:[#allocation2 + $0x2c0] ss:$16 sps:$4 sm:$0xff]   ;;  %v1557_v9 = vld [vmem:[#allocation2 + $0x2cc] ss:$16 sps:$4 sm:$0xff]   ;;  %v1555_v10 = vld [vmem:[#allocation2 + $0x2c8] ss:$16 sps:$4 sm:$0xff]  }
  0x37   :  { %v1560_v11 = vld [vmem:[#allocation2 + $0x2a4] ss:$16 sps:$4 sm:$0xff]   ;;  %v1563_v12 = vld [vmem:[#allocation2 + $0x2ac] ss:$16 sps:$4 sm:$0xff]   ;;  %v1558_v13 = vld [vmem:[#allocation2 + $0x2a0] ss:$16 sps:$4 sm:$0xff]  }
  0x38   :  { %483 = vmatpush1.bf16.msra.mxu0 %v1481_v24  ;;  %v1561_v14 = vld [vmem:[#allocation2 + $0x2a8] ss:$16 sps:$4 sm:$0xff]   ;;  %v1566_v15 = vld [vmem:[#allocation2 + $0x284] ss:$16 sps:$4 sm:$0xff]   ;;  %v1569_v16 = vld [vmem:[#allocation2 + $0x28c] ss:$16 sps:$4 sm:$0xff]  }
  0x39   :  { %484 = vmatprep.subr.bf16.mxu0 %v1483_v25  ;;  %524 = vmatpush1.bf16.msra.mxu1 %v1500_v30  ;;  %v1564_v17 = vld [vmem:[#allocation2 + $0x280] ss:$16 sps:$4 sm:$0xff]   ;;  %v1567_v18 = vld [vmem:[#allocation2 + $0x288] ss:$16 sps:$4 sm:$0xff]   ;;  %v1572_v19 = vld [vmem:[#allocation2 + $0x264] ss:$16 sps:$4 sm:$0xff]  }
  0x3a   :  { %525 = vmatprep.subr.bf16.mxu1 %v1503_v31  ;;  %v1575_v20 = vld [vmem:[#allocation2 + $0x26c] ss:$16 sps:$4 sm:$0xff]   ;;  %v1570_v21 = vld [vmem:[#allocation2 + $0x260] ss:$16 sps:$4 sm:$0xff]   ;;  %v1573_v22 = vld [vmem:[#allocation2 + $0x268] ss:$16 sps:$4 sm:$0xff]  }
  0x3b   :  { %v1578_v23 = vld [vmem:[#allocation2 + $0x244] ss:$16 sps:$4 sm:$0xff]   ;;  %v1581_v24 = vld [vmem:[#allocation2 + $0x24c] ss:$16 sps:$4 sm:$0xff]   ;;  %v1576_v25 = vld [vmem:[#allocation2 + $0x240] ss:$16 sps:$4 sm:$0xff]  }
  0x3c   :  { %485 = vmatpush1.bf16.msra.mxu0 %v1487_v28  ;;  %v1579_v26 = vld [vmem:[#allocation2 + $0x248] ss:$16 sps:$4 sm:$0xff]   ;;  %v1584_v27 = vld [vmem:[#allocation2 + $0x224] ss:$16 sps:$4 sm:$0xff]   ;;  %v1587_v28 = vld [vmem:[#allocation2 + $0x22c] ss:$16 sps:$4 sm:$0xff]  }
  0x3d   :  { %486 = vmatprep.subr.bf16.mxu0 %v1489_v29  ;;  %526 = vmatpush1.bf16.msra.mxu1 %v1506_v34  ;;  %v1582_v29 = vld [vmem:[#allocation2 + $0x220] ss:$16 sps:$4 sm:$0xff]   ;;  %v1585_v30 = vld [vmem:[#allocation2 + $0x228] ss:$16 sps:$4 sm:$0xff]   ;;  %v1590_v31 = vld [vmem:[#allocation2 + $0x204] ss:$16 sps:$4 sm:$0xff]  }
  0x3e   :  { %527 = vmatprep.subr.bf16.mxu1 %v1509_v35  ;;  %v1591_v34 = vld [vmem:[#allocation2 + $0x208] ss:$16 sps:$4 sm:$0xff]   ;;  %v1596_v35 = vld [vmem:[#allocation2 + $0x3e4] ss:$16 sps:$4 sm:$0xff]   ;;  %v1605_v40 = vld [vmem:[#allocation2 + $0x3cc] ss:$16 sps:$4 sm:$0xff]  }
  0x3f   :  { %v1603_v42 = vld [vmem:[#allocation2 + $0x3c8] ss:$16 sps:$4 sm:$0xff]   ;;  %vm1797_vm0 = vmmov 0   ;;  %s1798_s11 = smov [#allocation8]   ;;  %s1799_s13 = smov [#allocation7]  }
  0x40   :  { %487 = vmatpush2.bf16.msra.mxu0 %v1493_v32  ;;  %v1593_v32 = vld [vmem:[#allocation2 + $0x20c] ss:$16 sps:$4 sm:$0xff]   ;;  %s1232_s12 = sshll.u32 %s1798_s11, 4  ;;  %s1233_s12 = int_to_ptr.vmem [resolvable:$true] %s1232_s12 }
  0x41   :  { %488 = vmatprep.subr.bf16.mxu0 %v1495_v33  ;;  %528 = vmatpush2.bf16.msra.mxu1 %v1512_v38  ;;  %v1588_v33 = vld [vmem:[#allocation2 + $0x200] ss:$16 sps:$4 sm:$0xff]   ;;  %v1597_v38 = vld [vmem:[#allocation2 + $0x3e8] ss:$16 sps:$4 sm:$0xff]   ;;  %s1722_s14 = scalar_lea.vmem %s1233_s12, 64  ;;  %p1727_p11 = scmp.lt.s32.totalorder %s1233_s12, %s1233_s12 }
  0x42   :  { %529 = vmatprep.subr.bf16.mxu1 %v1515_v39  ;;  %v1602_v39 = vld [vmem:[#allocation2 + $0x3c4] ss:$16 sps:$4 sm:$0xff]   ;;  %p1723_p10 = scmp.ne.s32.totalorder %s1233_s12, %s1722_s14  ;;  %p1728_p12 = scmp.lt.s32.totalorder %s1722_s14, %s1722_s14 }
  0x44   :  { %489 = vmatpush2.bf16.msra.mxu0 %v1499_v36  ;;  %v1599_v36 = vld [vmem:[#allocation2 + $0x3ec] ss:$16 sps:$4 sm:$0xff]   ;;  %p1729_p13 = por %p1728_p12, %p1727_p11 }
  0x45   :  { %490 = vmatprep.subr.bf16.mxu0 %v1501_v37  ;;  %530 = vmatpush2.bf16.msra.mxu1 %v1518_v44  ;;  %v1594_v37 = vld [vmem:[#allocation2 + $0x3e0] ss:$16 sps:$4 sm:$0xff]   ;;  %v1611_v44 = vld [vmem:[#allocation2 + $0x3ac] ss:$16 sps:$4 sm:$0xff]  }
  0x46   :  { %531 = vmatprep.subr.bf16.mxu1 %v1521_v45  ;;  %v1606_v45 = vld [vmem:[#allocation2 + $0x3a0] ss:$16 sps:$4 sm:$0xff]   ;;  %p1730_p0 = pnand %p1729_p13, %p1723_p10 }
  0x48   :  { %491 = vmatpush2.bf16.msra.mxu0 %v1505_v41  ;;  %v1600_v41 = vld [vmem:[#allocation2 + $0x3c0] ss:$16 sps:$4 sm:$0xff]  }
  0x49   :  { %492 = vmatprep.subr.bf16.mxu0 %v1507_v43  ;;  %532 = vmatpush2.bf16.msra.mxu1 %v1524_v48  ;;  %v1608_v43 = vld [vmem:[#allocation2 + $0x3a4] ss:$16 sps:$4 sm:$0xff]   ;;  %v1617_v48 = vld [vmem:[#allocation2 + $0x38c] ss:$16 sps:$4 sm:$0xff]  }
  0x4a   :  { %533 = vmatprep.subr.bf16.mxu1 %v1527_v49  ;;  %v1612_v49 = vld [vmem:[#allocation2 + $0x380] ss:$16 sps:$4 sm:$0xff]  }
  0x4c   :  { %493 = vmatpush2.bf16.msra.mxu0 %v1511_v46  ;;  %v1609_v46 = vld [vmem:[#allocation2 + $0x3a8] ss:$16 sps:$4 sm:$0xff]  }
  0x4d   :  { %494 = vmatprep.subr.bf16.mxu0 %v1513_v47  ;;  %534 = vmatpush2.bf16.msra.mxu1 %v1530_v52  ;;  %v1614_v47 = vld [vmem:[#allocation2 + $0x384] ss:$16 sps:$4 sm:$0xff]  }
  0x4e   :  { %535 = vmatprep.subr.bf16.mxu1 %v1533_v53  ;;  %v1620_v52 = vld [vmem:[#allocation2 + $0x364] ss:$16 sps:$4 sm:$0xff]   ;;  %v1621_v53 = vld [vmem:[#allocation2 + $0x368] ss:$16 sps:$4 sm:$0xff]  }
  0x50   :  { %495 = vmatpush2.bf16.msra.mxu0 %v1517_v50  ;;  %v1615_v50 = vld [vmem:[#allocation2 + $0x388] ss:$16 sps:$4 sm:$0xff]  }
  0x51   :  { %496 = vmatprep.subr.bf16.mxu0 %v1519_v51  ;;  %536 = vmatpush2.bf16.msra.mxu1 %v1536_v56  ;;  %v1618_v51 = vld [vmem:[#allocation2 + $0x360] ss:$16 sps:$4 sm:$0xff]   ;;  %v1629_v56 = vld [vmem:[#allocation2 + $0x34c] ss:$16 sps:$4 sm:$0xff]  }
  0x52   :  { %537 = vmatprep.subr.bf16.mxu1 %v1537_v57  ;;  %v1624_v57 = vld [vmem:[#allocation2 + $0x340] ss:$16 sps:$4 sm:$0xff]  }
  0x54   :  { %497 = vmatpush2.bf16.msra.mxu0 %v1523_v54  ;;  %v1623_v54 = vld [vmem:[#allocation2 + $0x36c] ss:$16 sps:$4 sm:$0xff]  }
  0x55   :  { %498 = vmatprep.subr.bf16.mxu0 %v1525_v55  ;;  %538 = vmatpush2.bf16.msra.mxu1 %v1539_v60  ;;  %v1626_v55 = vld [vmem:[#allocation2 + $0x344] ss:$16 sps:$4 sm:$0xff]   ;;  %v1635_v60 = vld [vmem:[#allocation2 + $0x32c] ss:$16 sps:$4 sm:$0xff]  }
  0x56   :  { %539 = vmatprep.subr.bf16.mxu1 %v1540_v61  ;;  %v1329_v61 = vld [vmem:[%s1915_s1 + $0x2] sm:$0x3] }
  0x58   :  { %499 = vmatpush2.bf16.msra.mxu0 %v1529_v58  ;;  %v1627_v58 = vld [vmem:[#allocation2 + $0x348] ss:$16 sps:$4 sm:$0xff]  }
  0x59   :  { %500 = vmatprep.subr.bf16.mxu0 %v1531_v59  ;;  %540 = vmatpush2.bf16.msra.mxu1 %v1542_v63  ;;  %v1632_v59 = vld [vmem:[#allocation2 + $0x324] ss:$16 sps:$4 sm:$0xff]   ;;  %v1630_v63 = vld [vmem:[#allocation2 + $0x320] ss:$16 sps:$4 sm:$0xff]  }
  0x5a   :  { %541 = vmatprep.subr.bf16.mxu1 %v1543_v1  ;;  %v1638_v1 = vld [vmem:[#allocation2 + $0x304] ss:$16 sps:$4 sm:$0xff]  }
  0x5c   :  { %501 = vmatpush2.bf16.msra.mxu0 %v1535_v62  ;;  %v583_v62 = vpack.c.bf16 %v1329_v61, %v1329_v61 }
  0x5d   :  { %992 = vmatprep.subr.bf16.mxu0 %v1548_v0  ;;  %542 = vmatpush2.bf16.msra.mxu1 %v1545_v4  ;;  %v1633_v0 = vld [vmem:[#allocation2 + $0x328] ss:$16 sps:$4 sm:$0xff]  }
  0x5e   :  { %1033 = vmatprep.subr.bf16.mxu1 %v1551_v6  ;;  %v1639_v4 = vld [vmem:[#allocation2 + $0x308] ss:$16 sps:$4 sm:$0xff]  }
  0x5f   :  { %503 = vmatmul.mubr.bf16.vlgmr.msra.gmra.mxu0 %v60_v2 }
  0x60   :  { %993 = vmatpush1.bf16.msra.mxu0 %v1546_v3  ;;  %544 = vmatmul.mubr.bf16.vlgmr.msra.gmra.mxu1 %v60_v2  ;;  %v1641_v2 = vld [vmem:[#allocation2 + $0x30c] ss:$16 sps:$4 sm:$0xff]   ;;  %v1636_v3 = vld [vmem:[#allocation2 + $0x300] ss:$16 sps:$4 sm:$0xff]  }
  0x61   :  { %994 = vmatprep.subr.bf16.mxu0 %v1554_v5  ;;  %1034 = vmatpush1.bf16.msra.mxu1 %v1549_v8  ;;  %v130_v5 = vlaneseq  ;;  %v128_v8 = vld [vmem:[%s1918_s4] sm:$0xf] }
  0x62   :  { %1035 = vmatprep.subr.bf16.mxu1 %v1557_v9  ;;  %1024 = vmatprep.mubr.bf16.mxu0 %v583_v62 }
  0x63   :  { %1065 = vmatprep.mubr.bf16.mxu1 %v583_v62  ;;  %v1868_v6 = vshrl.u32 %v130_v5, 7 }
  0x64   :  { %995 = vmatpush1.bf16.msra.mxu0 %v1552_v7 }
  0x65   :  { %1036 = vmatpush1.bf16.msra.mxu1 %v1555_v10  ;;  %996 = vmatprep.subr.bf16.mxu0 %v1560_v11  ;;  %v132_v7 = vsub.s32 0, %v1868_v6  ;;  %v136_v9 = vsub.s32 1, %v1868_v6 }
  0x66   :  { %1037 = vmatprep.subr.bf16.mxu1 %v1563_v12 }
  0x67   :  { %v133_v10 = vrot.slane %v128_v8, %v132_v7  ;;  %v137_v11 = vrot.slane %v128_v8, %v136_v9 }
  0x68   :  { %997 = vmatpush1.bf16.msra.mxu0 %v1558_v13 }
  0x69   :  { %1038 = vmatpush1.bf16.msra.mxu1 %v1561_v14  ;;  %998 = vmatprep.subr.bf16.mxu0 %v1566_v15 }
  0x6a   :  { %1039 = vmatprep.subr.bf16.mxu1 %v1569_v16 }
  0x6c   :  { %999 = vmatpush1.bf16.msra.mxu0 %v1564_v17 }
  0x6d   :  { %1040 = vmatpush1.bf16.msra.mxu1 %v1567_v18  ;;  %1000 = vmatprep.subr.bf16.mxu0 %v1572_v19  ;;  %v144_v18 = vsub.s32 3, %v1868_v6 }
  0x6e   :  { %1041 = vmatprep.subr.bf16.mxu1 %v1575_v20 }
  0x70   :  { %1001 = vmatpush1.bf16.msra.mxu0 %v1570_v21 }
  0x71   :  { %1042 = vmatpush1.bf16.msra.mxu1 %v1573_v22  ;;  %1002 = vmatprep.subr.bf16.mxu0 %v1578_v23  ;;  %v140_v22 = vsub.s32 2, %v1868_v6 }
  0x72   :  { %1043 = vmatprep.subr.bf16.mxu1 %v1581_v24  ;;  %v145_v24 = vrot.slane %v128_v8, %v144_v18 }
  0x74   :  { %1003 = vmatpush1.bf16.msra.mxu0 %v1576_v25 }
  0x75   :  { %1044 = vmatpush1.bf16.msra.mxu1 %v1579_v26  ;;  %1004 = vmatprep.subr.bf16.mxu0 %v1584_v27  ;;  %v141_v26 = vrot.slane %v128_v8, %v140_v22 }
  0x76   :  { %1045 = vmatprep.subr.bf16.mxu1 %v1587_v28 }
  0x78   :  { %1005 = vmatpush1.bf16.msra.mxu0 %v1582_v29 }
  0x79   :  { %1046 = vmatpush1.bf16.msra.mxu1 %v1585_v30  ;;  %1006 = vmatprep.subr.bf16.mxu0 %v1590_v31 }
  0x7a   :  { %1047 = vmatprep.subr.bf16.mxu1 %v1593_v32 }
  0x7c   :  { %1007 = vmatpush1.bf16.msra.mxu0 %v1588_v33 }
  0x7d   :  { %1048 = vmatpush1.bf16.msra.mxu1 %v1591_v34  ;;  %1008 = vmatprep.subr.bf16.mxu0 %v1596_v35 }
  0x7e   :  { %1049 = vmatprep.subr.bf16.mxu1 %v1599_v36 }
  0x80   :  { %1009 = vmatpush2.bf16.msra.mxu0 %v1594_v37 }
  0x81   :  { %1050 = vmatpush2.bf16.msra.mxu1 %v1597_v38  ;;  %1010 = vmatprep.subr.bf16.mxu0 %v1602_v39  ;;  %v62_v38 = vld [vmem:[%s1916_s2] sm:$0x3] }
  0x82   :  { %1051 = vmatprep.subr.bf16.mxu1 %v1605_v40 }
  0x84   :  { %1011 = vmatpush2.bf16.msra.mxu0 %v1600_v41 }
  0x85   :  { %1052 = vmatpush2.bf16.msra.mxu1 %v1603_v42  ;;  %1012 = vmatprep.subr.bf16.mxu0 %v1608_v43 }
  0x86   :  { %1053 = vmatprep.subr.bf16.mxu1 %v1611_v44 }
  0x88   :  { %1013 = vmatpush2.bf16.msra.mxu0 %v1606_v45 }
  0x89   :  { %1054 = vmatpush2.bf16.msra.mxu1 %v1609_v46  ;;  %1014 = vmatprep.subr.bf16.mxu0 %v1614_v47 }
  0x8a   :  { %1055 = vmatprep.subr.bf16.mxu1 %v1617_v48  ;;  %v1642_v48 = vld [vmem:[#allocation5 + $0x38] sm:$0xff]  }
  0x8c   :  { %1015 = vmatpush2.bf16.msra.mxu0 %v1612_v49  ;;  %v1796_v49 = vmov 0.0  }
  0x8d   :  { %1056 = vmatpush2.bf16.msra.mxu1 %v1615_v50  ;;  %1016 = vmatprep.subr.bf16.mxu0 %v1620_v52  ;;  %v1643_v50 = vld [vmem:[#allocation5 + $0x30] sm:$0xff]   ;;  %v1645_v52 = vld [vmem:[#allocation5 + $0x20] sm:$0xff]  }
  0x8e   :  { %1057 = vmatprep.subr.bf16.mxu1 %v1623_v54  ;;  %v1647_v54 = vld [vmem:[#allocation5 + $0x10] sm:$0xff]  }
  0x90   :  { %1017 = vmatpush2.bf16.msra.mxu0 %v1618_v51  ;;  %v1644_v51 = vld [vmem:[#allocation5 + $0x28] sm:$0xff]  }
  0x91   :  { %1058 = vmatpush2.bf16.msra.mxu1 %v1621_v53  ;;  %1018 = vmatprep.subr.bf16.mxu0 %v1626_v55  ;;  %v1646_v53 = vld [vmem:[#allocation5 + $0x18] sm:$0xff]   ;;  %v1648_v55 = vld [vmem:[#allocation5 + $0x8] sm:$0xff]  }
  0x92   :  { %1059 = vmatprep.subr.bf16.mxu1 %v1629_v56  ;;  %v1649_v56 = vld [vmem:[#allocation5] sm:$0xff]  }
  0x94   :  { %1019 = vmatpush2.bf16.msra.mxu0 %v1624_v57  ;;  %v1331_v57 = vld [vmem:[%s1918_s4 + $0x4] sm:$0xf] }
  0x95   :  { %1060 = vmatpush2.bf16.msra.mxu1 %v1627_v58  ;;  %1020 = vmatprep.subr.bf16.mxu0 %v1632_v59  ;;  %v655_v58 = vrot.slane %v1331_v57, %v132_v7  ;;  %v659_v59 = vrot.slane %v1331_v57, %v136_v9  ;;  %v667_v7 = vrot.slane %v1331_v57, %v144_v18  ;;  %v1330_v18 = vld [vmem:[%s1916_s2 + $0x2] sm:$0x3]  ;;  %s1220_s2 = sshll.u32 %s1799_s13, 4  ;;  %s1221_s2 = int_to_ptr.vmem [resolvable:$true] %s1220_s2 }
  0x96   :  { %1061 = vmatprep.subr.bf16.mxu1 %v1635_v60  ;;  %v663_v9 = vrot.slane %v1331_v57, %v140_v22 }
  0x98   :  { %1021 = vmatpush2.bf16.msra.mxu0 %v1630_v63 }
  0x99   :  { %1062 = vmatpush2.bf16.msra.mxu1 %v1633_v0  ;;  %1022 = vmatprep.subr.bf16.mxu0 %v1638_v1 }
  0x9a   :  { %1063 = vmatprep.subr.bf16.mxu1 %v1641_v2 }
  0x9c   :  { %1023 = vmatpush2.bf16.msra.mxu0 %v1636_v3 }
  0x9d   :  { %1064 = vmatpush2.bf16.msra.mxu1 %v1639_v4  ;;  %1417 = vmatprep.subr.bf16.mxu0 %v1796_v49 }
 0x11f   :  { %v504_v12 = vpop.f32.mrf.mxu0 }
 0x120   :  { %v505_v13 = vadd.f32 %v504_v12, %v133_v10  ;;  %v545_v20 = vpop.f32.mrf.mxu1 }
 0x121   :  { %v506_v14 = vpop.f32.mrf.mxu0  ;;  %v546_v29 = vadd.f32 %v545_v20, %v141_v26 }
 0x122   :  { %v1326_v15 = vmul.f32 -1.442695, %v505_v13  ;;  %v507_v16 = vadd.f32 %v506_v14, %v137_v11  ;;  %v547_v23 = vpop.f32.mrf.mxu1 }
 0x123   :  { %v508_v17 = vpop.f32.mrf.mxu0  ;;  %v548_v28 = vadd.f32 %v547_v23, %v145_v24 }
 0x124   :  { %1650 = vpow2.f32 %v1326_v15  ;;  %v1327_v19 = vmul.f32 -1.442695, %v507_v16  ;;  %v549_v25 = vpop.f32.mrf.mxu1 }
 0x125   :  { %v509_v21 = vpop.f32.mrf.mxu0  ;;  %v1328_v30 = vmul.f32 -1.442695, %v548_v28 }
 0x126   :  { %1652 = vpow2.f32 %v1327_v19  ;;  %v550_v27 = vpop.f32.mrf.mxu1 }
 0x127   :  { %1654 = vtanh.f32 %v546_v29 }
 0x128   :  { %1656 = vpow2.f32 %v1328_v30 }
 0x131   :  { %v1651_v31 = vpop.eup %1650 }
 0x132   :  { %v555_v32 = vadd.f32 1.0, %v1651_v31 }
 0x133   :  { %v1653_v33 = vpop.eup %1652 }
 0x134   :  { %1658 = vrcp.f32 %v555_v32  ;;  %v561_v34 = vadd.f32 1.0, %v1653_v33  ;;  %v1655_v35 = vpop.eup %1654 }
 0x135   :  { %v1657_v36 = vpop.eup %1656 }
 0x136   :  { %1660 = vrcp.f32 %v561_v34  ;;  %v568_v40 = vadd.f32 1.0, %v1657_v36 }
 0x138   :  { %1662 = vrcp.f32 %v568_v40 }
 0x141   :  { %v1659_v37 = vpop.eup %1658 }
 0x142   :  { %v572_v42 = vmul.f32 %v1659_v37, %v1655_v35 }
 0x143   :  { %v1661_v39 = vpop.eup %1660 }
 0x144   :  { %v571_v41 = vmul.f32 %v1661_v39, %v62_v38 }
 0x145   :  { %v1663_v44 = vpop.eup %1662 }
 0x146   :  { %v573_v43 = vadd.f32 %v572_v42, %v571_v41 }
 0x148   :  { %1664 = vtanh.f32 %v573_v43  ;;  %577 = vst [vmem:[#allocation8] sm:$0x3] %v573_v43 }
 0x155   :  { %v1665_v45 = vpop.eup %1664 }
 0x156   :  { %v575_v46 = vmul.f32 %v1665_v45, %v1663_v44 }
 0x158   :  { %v578_v47 = vpack.c.bf16 %v575_v46, %v575_v46  ;;  %576 = vst [vmem:[#allocation7] sm:$0x3] %v575_v46 }
 0x15a   :  { %1025 = vmatmul.mubr.bf16.vlgmr.msra.gmra.mxu0 %v578_v47  ;;  %1066 = vmatmul.mubr.bf16.vlgmr.msra.gmra.mxu1 %v578_v47 }
 0x15b   :  { %1418 = vmatpush3.bf16.msra.mxu0 %v1642_v48  ;;  %1433 = vmatprep.mubr.msk.bf16.mxu0 %vm1797_vm0, %v1796_v49 }
 0x15c   :  { %1419 = vmatprep.subr.bf16.mxu0 %v1796_v49 }
 0x15f   :  { %1420 = vmatpush3.bf16.msra.mxu0 %v1643_v50 }
 0x160   :  { %1421 = vmatprep.subr.bf16.mxu0 %v1796_v49 }
 0x163   :  { %1422 = vmatpush3.bf16.msra.mxu0 %v1644_v51 }
 0x164   :  { %1423 = vmatprep.subr.bf16.mxu0 %v1796_v49 }
 0x167   :  { %1424 = vmatpush3.bf16.msra.mxu0 %v1645_v52 }
 0x168   :  { %1425 = vmatprep.subr.bf16.mxu0 %v1796_v49 }
 0x16b   :  { %1426 = vmatpush3.bf16.msra.mxu0 %v1646_v53 }
 0x16c   :  { %1427 = vmatprep.subr.bf16.mxu0 %v1796_v49 }
 0x16f   :  { %1428 = vmatpush3.bf16.msra.mxu0 %v1647_v54 }
 0x170   :  { %1429 = vmatprep.subr.bf16.mxu0 %v1796_v49 }
 0x173   :  { %1430 = vmatpush3.bf16.msra.mxu0 %v1648_v55 }
 0x174   :  { %1431 = vmatprep.subr.bf16.mxu0 %v1796_v49 }
 0x177   :  { %1432 = vmatpush3.bf16.msra.mxu0 %v1649_v56 }
 0x21a   :  { %v1026_v60 = vpop.f32.mrf.mxu0  ;;  %v1067_v61 = vpop.f32.mrf.mxu1 }
 0x21b   :  { %v1027_v62 = vadd.f32 %v1026_v60, %v655_v58  ;;  %v1068_v14 = vadd.f32 %v1067_v61, %v663_v9 }
 0x21c   :  { %v1028_v63 = vpop.f32.mrf.mxu0  ;;  %v1069_v0 = vpop.f32.mrf.mxu1 }
 0x21d   :  { %v1396_v1 = vmul.f32 -1.442695, %v1027_v62  ;;  %v1029_v2 = vadd.f32 %v1028_v63, %v659_v59  ;;  %v1070_v11 = vadd.f32 %v1069_v0, %v667_v7 }
 0x21e   :  { %v1030_v3 = vpop.f32.mrf.mxu0  ;;  %v1071_v4 = vpop.f32.mrf.mxu1 }
 0x21f   :  { %1666 = vpow2.f32 %v1396_v1  ;;  %v1397_v5 = vmul.f32 -1.442695, %v1029_v2  ;;  %v1398_v12 = vmul.f32 -1.442695, %v1070_v11 }
 0x220   :  { %v1031_v8 = vpop.f32.mrf.mxu0  ;;  %v1072_v10 = vpop.f32.mrf.mxu1 }
 0x221   :  { %1668 = vpow2.f32 %v1397_v5 }
 0x222   :  { %1670 = vpow2.f32 %v1398_v12 }
 0x22c   :  { %v1667_v13 = vpop.eup %1666 }
 0x22d   :  { %v1077_v15 = vadd.f32 1.0, %v1667_v13 }
 0x22e   :  { %v1669_v16 = vpop.eup %1668 }
 0x22f   :  { %1672 = vrcp.f32 %v1077_v15  ;;  %v1083_v17 = vadd.f32 1.0, %v1669_v16  ;;  %v1671_v19 = vpop.eup %1670 }
 0x230   :  { %1674 = vtanh.f32 %v1068_v14  ;;  %v1090_v6 = vadd.f32 1.0, %v1671_v19 }
 0x231   :  { %1676 = vrcp.f32 %v1083_v17 }
 0x232   :  { %1678 = vrcp.f32 %v1090_v6 }
 0x23c   :  { %v1673_v20 = vpop.eup %1672 }
 0x23d   :  { %v1675_v21 = vpop.eup %1674 }
 0x23e   :  { %v1677_v23 = vpop.eup %1676  ;;  %v1094_v22 = vmul.f32 %v1675_v21, %v1673_v20 }
 0x23f   :  { %v1093_v24 = vmul.f32 %v1677_v23, %v1330_v18  ;;  %v1679_v26 = vpop.eup %1678 }
 0x241   :  { %v1095_v25 = vadd.f32 %v1094_v22, %v1093_v24 }
 0x243   :  { %1101 = vst [vmem:[#allocation8 + $0x2] sm:$0x3] %v1095_v25  ;;  %1680 = vtanh.f32 %v1095_v25 }
 0x250   :  { %v1681_v27 = vpop.eup %1680 }
 0x251   :  { %v1097_v28 = vmul.f32 %v1681_v27, %v1679_v26 }
 0x253   :  { %v1102_v29 = vpack.c.bf16 %v1097_v28, %v1097_v28  ;;  %1099 = vst [vmem:[#allocation7 + $0x2] sm:$0x3] %v1097_v28 }
 0x255   :  { %1434 = vmatmul.mubr.bf16.vlgmr.msra.gmra.mxu0 %v1102_v29 }
 0x256   :  { %1733 = shalt.err (!%p1730_p0)
}
 0x257   :  { %s1800_s15 = smov 32   ;;  %s1801_s16 = smov 2  }
 0x258   :  { %1238 = dma.vmem_to_hbm [thread:$0]  %s1233_s12, 64, %s1922_s8, [#allocation9], %s1800_s15, %s1800_s15, %s1801_s16  }
 0x259   :  { %s1742_s19 = scalar_lea.vmem %s1221_s2, 64  ;;  %p1747_p2 = scmp.lt.s32.totalorder %s1221_s2, %s1221_s2 }
 0x25a   :  { %p1743_p1 = scmp.ne.s32.totalorder %s1221_s2, %s1742_s19  ;;  %p1748_p3 = scmp.lt.s32.totalorder %s1742_s19, %s1742_s19 }
 0x25c   :  { %p1749_p4 = por %p1748_p3, %p1747_p2 }
 0x25e   :  { %p1750_p5 = pnand %p1749_p4, %p1743_p1 }
 0x260   :  { %1753 = shalt.err (!%p1750_p5)
}
 0x261   :  { %1226 = dma.vmem_to_hbm [thread:$0]  %s1221_s2, 64, %s1921_s7, [#allocation4], %s1800_s15, %s1800_s15, %s1801_s16  }
 0x262   :  { %v1399_v30 = vld [vmem:[%s1920_s6] ss:$0 sm:$0xff]  ;;  %s1802_s5 = smov [#allocation10]  }
 0x263   :  { %s1245_s23 = sshll.u32 %s1802_s5, 4  ;;  %s1246_s23 = int_to_ptr.vmem [resolvable:$true] %s1245_s23 }
 0x264   :  { %s1762_s8 = scalar_lea.vmem %s1246_s23, 32  ;;  %p1767_p7 = scmp.lt.s32.totalorder %s1246_s23, %s1246_s23 }
 0x265   :  { %p1763_p6 = scmp.ne.s32.totalorder %s1246_s23, %s1762_s8  ;;  %p1768_p8 = scmp.lt.s32.totalorder %s1762_s8, %s1762_s8 }
 0x267   :  { %p1769_p9 = por %p1768_p8, %p1767_p7 }
 0x269   :  { %p1770_p10 = pnand %p1769_p9, %p1763_p6 }
 0x315   :  { %v1208_v31 = vpop.f32.mrf.mxu0 }
 0x316   :  { %v1209_v32 = vadd.f32 %v1399_v30, %v1208_v31 }
 0x317   :  { %v1435_v33 = vpop.f32.mrf.mxu0 }
 0x318   :  { %1214 = vst [vmem:[#allocation10] sm:$0x3] %v1209_v32 }
 0x319   :  { %v1211_v34 = vpop.f32.mrf.mxu0 }
 0x31a   :  { %1773 = shalt.err (!%p1770_p10)
}
 0x31b   :  { %1248 = dma.vmem_to_hbm [thread:$0]  %s1246_s23, 32, %s1923_s9, [#allocation9]   ;;  %v1436_v35 = vpop.f32.mrf.mxu0 }
 0x31c   :  { %1786 = dma.done.wait [#allocation4], 64  }
 0x31d   :  { %1787 = vsyncadd [#allocation4], 4294967232 }
 0x31e   :  { %1788 = dma.done.wait [#allocation9], 96  }
 0x31f   :  { %1789 = vsyncadd [#allocation9], 4294967200 }
 0x320   :  { %1258 = vsyncpa [#allocation3], 1 }
 0x321   :  { %1259 = vsyncpa [#allocation6], 1 }
 0x322   :  { %1260 = vsyncpa [#allocation4], 1 }
 0x323   :  { %1261 = vsyncpa [#allocation9], 1 }

</bundles_post_ra>
